<compile_context>
chip_gen: v5e
topology: v5e:2x2
jax: 0.10.0
libtpu: 0.0.40
codegen_flags: <defaults>
</compile_context>

<pallas_src>
import functools

import jax
import jax.numpy as jnp
from jax.experimental import pallas as pl
from jax.experimental.pallas import tpu as pltpu

EPS = 1e-5  # nn.BatchNorm2d default


# --------------------------------------------------------------------------
# Kernels
# --------------------------------------------------------------------------
def _conv_stats_kernel(x_ref, w_ref, y_ref, st_ref):
    """3x3 conv (3 banded MXU matmuls) + per-image BN partial stats.

    x_ref:  (1, H+2, (W+2)*Cin)    bf16, zero-padded, (W,C) folded into lanes
    w_ref:  (3, (W+2)*Cin, W*Cout) bf16 banded weights (kh-indexed)
    y_ref:  (1, H, W*Cout)         f32 raw conv output (lane-dense)
    st_ref: (1, 2, W*Cout)         f32 [sum over H ; sum of squares over H]
    """
    H = y_ref.shape[1]
    x = x_ref[0]                                     # (H+2, (W+2)*Cin) bf16
    acc = jnp.zeros(y_ref.shape[1:], jnp.float32)    # (H, W*Cout)
    for kh in range(3):                              # 3 MXU pushes, big K
        acc = acc + jnp.dot(x[kh:kh + H, :], w_ref[kh],
                            preferred_element_type=jnp.float32)
    y_ref[0] = acc
    s = jnp.sum(acc, axis=0, keepdims=True)          # single-pass stats
    ss = jnp.sum(acc * acc, axis=0, keepdims=True)
    st_ref[0] = jnp.concatenate([s, ss], axis=0)


def _bn_relu_conv_stats_kernel(y1_ref, sc_ref, sh_ref, w_ref,
                               y2_ref, st_ref, pad_ref, *, W, Cmid):
    """BN(prev conv; precomputed scale/shift) -> ReLU -> 3x3 conv -> stats.

    y1_ref:  (1, H, W*Cmid)           f32 raw conv1 output
    sc_ref:  (1, W*Cmid)              f32 folded BN scale (gamma*rsqrt(var+eps))
    sh_ref:  (1, W*Cmid)              f32 folded BN shift (beta - mean*scale)
    w_ref:   (3, (W+2)*Cmid, W*Cout)  bf16 banded conv2 weights
    y2_ref:  (1, H, W*Cout)           f32 raw conv2 output
    st_ref:  (1, 2, W*Cout)           f32 partial stats
    pad_ref: VMEM (H+2, (W+2)*Cmid)   f32 scratch: activation + 1px zero halo
    """
    H = y1_ref.shape[1]
    Wp2C = (W + 2) * Cmid

    a1 = jnp.maximum(y1_ref[0] * sc_ref[0] + sh_ref[0], 0.0)    # (H, W*Cmid)

    # Zero ONLY the 1-pixel halo ring; write activation straight to interior.
    zrow = jnp.zeros((1, Wp2C), jnp.float32)
    zcol = jnp.zeros((H, Cmid), jnp.float32)
    pad_ref[0:1, :] = zrow
    pad_ref[H + 1:H + 2, :] = zrow
    pad_ref[1:H + 1, 0:Cmid] = zcol
    pad_ref[1:H + 1, (W + 1) * Cmid:Wp2C] = zcol
    pad_ref[1:H + 1, Cmid:(W + 1) * Cmid] = a1

    acc = jnp.zeros(y2_ref.shape[1:], jnp.float32)
    for kh in range(3):
        xk = pad_ref[kh:kh + H, :].astype(jnp.bfloat16)          # bf16 MXU op
        acc = acc + jnp.dot(xk, w_ref[kh],
                            preferred_element_type=jnp.float32)
    y2_ref[0] = acc
    s = jnp.sum(acc, axis=0, keepdims=True)
    ss = jnp.sum(acc * acc, axis=0, keepdims=True)
    st_ref[0] = jnp.concatenate([s, ss], axis=0)


def _bn_relu_kernel(y_ref, sc_ref, sh_ref, o_ref):
    """Final BN -> ReLU (lane-dense elementwise)."""
    o_ref[0] = jnp.maximum(y_ref[0] * sc_ref[0] + sh_ref[0], 0.0)


# --------------------------------------------------------------------------
# Wrapper glue
# --------------------------------------------------------------------------
def _banded_conv_weights(w_oihw, W):
    """OIHW 3x3 weights -> (3, (W+2)*Cin, W*Cout) banded bf16 matrices.

    band[kh, p*Cin+c, j*Cout+o] = w[o, c, kh, p-j] if 0 <= p-j <= 2 else 0,
    so output column-block j contracts exactly x_pad[:, j:j+3, :].
    """
    Cout, Cin, KH, KW = w_oihw.shape
    w_t = jnp.transpose(w_oihw, (2, 3, 1, 0)).astype(jnp.float32)  # (kh,kw,Ci,Co)
    kw = jnp.arange(KW)[:, None, None]
    p = jnp.arange(W + 2)[None, :, None]
    j = jnp.arange(W)[None, None, :]
    sel = (p == j + kw).astype(jnp.float32)                        # (3, W+2, W)
    band = jnp.einsum('kpj,akcm->apcjm', sel, w_t)                 # (3,W+2,Ci,W,Co)
    return band.reshape(KH, (W + 2) * Cin, W * Cout).astype(jnp.bfloat16)


def _bn_scale_shift(stats, gamma, beta, count, W, C):
    """Finalize global train-mode BN from per-image (sum, sumsq) partials."""
    tot = jnp.sum(stats, axis=0).reshape(2, W, C).sum(axis=1)      # (2, C)
    mean = tot[0] / count
    var = jnp.maximum(tot[1] / count - mean * mean, 0.0)           # E[x^2]-E[x]^2
    scale = gamma.astype(jnp.float32) * jax.lax.rsqrt(var + EPS)
    shift = beta.astype(jnp.float32) - mean * scale
    return (jnp.tile(scale, W).reshape(1, W * C),
            jnp.tile(shift, W).reshape(1, W * C))


@jax.jit
def double_conv(x_nchw, w1_oihw, g1, b1, w2_oihw, g2, b2):
    """x_nchw: (N, Cin, H, W) -> (N, Cout, H, W), matching the PyTorch module."""
    N, Cin, H, W = x_nchw.shape
    Cmid = w1_oihw.shape[0]
    Cout = w2_oihw.shape[0]

    # Layout glue: NCHW -> NHWC, zero-pad, fold (W, C) into the lane axis.
    x = jnp.transpose(x_nchw, (0, 2, 3, 1)).astype(jnp.float32)
    x_fold = jnp.pad(x, ((0, 0), (1, 1), (1, 1), (0, 0))) \
                .reshape(N, H + 2, (W + 2) * Cin).astype(jnp.bfloat16)
    w1b = _banded_conv_weights(w1_oihw, W)       # (3, (W+2)*Cin,  W*Cmid)
    w2b = _banded_conv_weights(w2_oihw, W)       # (3, (W+2)*Cmid, W*Cout)

    cparams = pltpu.CompilerParams(
        dimension_semantics=("parallel",),        # v7x: split batch over 2 TCs
        vmem_limit_bytes=32 * 1024 * 1024)

    # ---- stage 1: conv1 + per-image BN1 partial stats ------------------
    y1, st1 = pl.pallas_call(
        _conv_stats_kernel,
        grid=(N,),
        in_specs=[
            pl.BlockSpec((1, H + 2, (W + 2) * Cin), lambda n: (n, 0, 0)),
            pl.BlockSpec((3, (W + 2) * Cin, W * Cmid), lambda n: (0, 0, 0)),
        ],
        out_specs=[
            pl.BlockSpec((1, H, W * Cmid), lambda n: (n, 0, 0)),
            pl.BlockSpec((1, 2, W * Cmid), lambda n: (n, 0, 0)),
        ],
        out_shape=(jax.ShapeDtypeStruct((N, H, W * Cmid), jnp.float32),
                   jax.ShapeDtypeStruct((N, 2, W * Cmid), jnp.float32)),
        compiler_params=cparams,
    )(x_fold, w1b)

    sc1, sh1 = _bn_scale_shift(st1, g1, b1, N * H * W, W, Cmid)

    # ---- stage 2: BN1 + ReLU + conv2 + per-image BN2 partial stats -----
    y2, st2 = pl.pallas_call(
        functools.partial(_bn_relu_conv_stats_kernel, W=W, Cmid=Cmid),
        grid=(N,),
        in_specs=[
            pl.BlockSpec((1, H, W * Cmid), lambda n: (n, 0, 0)),
            pl.BlockSpec((1, W * Cmid), lambda n: (0, 0)),
            pl.BlockSpec((1, W * Cmid), lambda n: (0, 0)),
            pl.BlockSpec((3, (W + 2) * Cmid, W * Cout), lambda n: (0, 0, 0)),
        ],
        out_specs=[
            pl.BlockSpec((1, H, W * Cout), lambda n: (n, 0, 0)),
            pl.BlockSpec((1, 2, W * Cout), lambda n: (n, 0, 0)),
        ],
        out_shape=(jax.ShapeDtypeStruct((N, H, W * Cout), jnp.float32),
                   jax.ShapeDtypeStruct((N, 2, W * Cout), jnp.float32)),
        scratch_shapes=[pltpu.VMEM((H + 2, (W + 2) * Cmid), jnp.float32)],
        compiler_params=cparams,
    )(y1, sc1, sh1, w2b)

    sc2, sh2 = _bn_scale_shift(st2, g2, b2, N * H * W, W, Cout)

    # ---- stage 3: BN2 + ReLU -------------------------------------------
    out_fold = pl.pallas_call(
        _bn_relu_kernel,
        grid=(N,),
        in_specs=[
            pl.BlockSpec((1, H, W * Cout), lambda n: (n, 0, 0)),
            pl.BlockSpec((1, W * Cout), lambda n: (0, 0)),
            pl.BlockSpec((1, W * Cout), lambda n: (0, 0)),
        ],
        out_specs=pl.BlockSpec((1, H, W * Cout), lambda n: (n, 0, 0)),
        out_shape=jax.ShapeDtypeStruct((N, H, W * Cout), jnp.float32),
        compiler_params=cparams,
    )(y2, sc2, sh2)

    # Unfold lanes back to (W, Cout) and return NCHW like the PyTorch module.
    return jnp.transpose(out_fold.reshape(N, H, W, Cout), (0, 3, 1, 2))


# --------------------------------------------------------------------------
# Pure-JAX reference: (conv -> train-mode BN -> ReLU) x 2, NCHW, f32.
# --------------------------------------------------------------------------
def _reference(x_nchw, w1, g1, b1, w2, g2, b2):
    def conv(x, w):
        return jax.lax.conv_general_dilated(
            x, w, window_strides=(1, 1), padding=((1, 1), (1, 1)),
            dimension_numbers=("NCHW", "OIHW", "NCHW"))

    def bn_relu(y, g, b):
        mean = jnp.mean(y, axis=(0, 2, 3), keepdims=True)
        var = jnp.mean((y - mean) ** 2, axis=(0, 2, 3), keepdims=True)
        yn = (y - mean) * jax.lax.rsqrt(var + EPS)
        yn = yn * g.reshape(1, -1, 1, 1) + b.reshape(1, -1, 1, 1)
        return jnp.maximum(yn, 0.0)

    y = bn_relu(conv(x_nchw, w1), g1, b1)
    return bn_relu(conv(y, w2), g2, b2)


if __name__ == "__main__":
    N, Cin, Cout, H, W = 2, 4, 8, 16, 16
    Cmid = Cout  # mid_channels defaults to out_channels

    key = jax.random.PRNGKey(0)
    kx, kw1, kw2 = jax.random.split(key, 3)

    x = jax.random.normal(kx, (N, Cin, H, W), dtype=jnp.float32)
    # Conv weights (OIHW, bias=False); BN affine defaults gamma=1, beta=0.
    w1 = jax.random.normal(kw1, (Cmid, Cin, 3, 3), dtype=jnp.float32) * 0.1
    w2 = jax.random.normal(kw2, (Cout, Cmid, 3, 3), dtype=jnp.float32) * 0.1
    g1, b1 = jnp.ones((Cmid,), jnp.float32), jnp.zeros((Cmid,), jnp.float32)
    g2, b2 = jnp.ones((Cout,), jnp.float32), jnp.zeros((Cout,), jnp.float32)

    out = jax.block_until_ready(double_conv(x, w1, g1, b1, w2, g2, b2))
    ref = _reference(x, w1, g1, b1, w2, g2, b2)

    assert out.shape == (N, Cout, H, W)
    # bf16 MXU operands (per perf review) -> looser tolerance than pure f32.
    assert jnp.allclose(out, ref, rtol=5e-2, atol=5e-2), \
        f"max abs err {jnp.max(jnp.abs(out - ref))}"
    print("KERNEL_OK")
</pallas_src>

<mosaic_0001>
module attributes {stable_mosaic.version = 11 : i64} {
  func.func @_conv_stats_kernel(%arg0: i32, %arg1: memref<1x18x72xbf16, #tpu.memory_space<vmem>>, %arg2: memref<3x72x128xbf16, #tpu.memory_space<vmem>>, %arg3: memref<1x16x128xf32, #tpu.memory_space<vmem>>, %arg4: memref<1x2x128xf32, #tpu.memory_space<vmem>>) attributes {dimension_semantics = [#tpu.dimension_semantics<parallel>], iteration_bounds = array<i64: 2>, scalar_prefetch = 0 : i64, scratch_operands = 0 : i64, tpu.core_type = #tpu.core_type<tc>, window_params = [{transform_indices = @transform_0, window_bounds = array<i64: 1, 18, 72>}, {pipeline_mode = #tpu.pipeline_mode<synchronous>, transform_indices = @transform_1, window_bounds = array<i64: 3, 72, 128>}, {transform_indices = @transform_2, window_bounds = array<i64: 1, 16, 128>}, {transform_indices = @transform_3, window_bounds = array<i64: 1, 2, 128>}]} {
    %c0 = arith.constant 0 : index
    %c0_0 = arith.constant 0 : index
    %c0_1 = arith.constant 0 : index
    %0 = vector.load %arg1[%c0, %c0_0, %c0_1] : memref<1x18x72xbf16, #tpu.memory_space<vmem>>, vector<1x18x72xbf16>
    %1 = vector.shape_cast %0 : vector<1x18x72xbf16> to vector<18x72xbf16>
    %cst = arith.constant 0.000000e+00 : f32
    %2 = vector.broadcast %cst : f32 to vector<16x128xf32>
    %3 = vector.extract_strided_slice %1 {offsets = [0, 0], sizes = [16, 72], strides = [1, 1]} : vector<18x72xbf16> to vector<16x72xbf16>
    %c0_2 = arith.constant 0 : index
    %c0_3 = arith.constant 0 : index
    %c0_4 = arith.constant 0 : index
    %4 = vector.load %arg2[%c0_2, %c0_3, %c0_4] : memref<3x72x128xbf16, #tpu.memory_space<vmem>>, vector<1x72x128xbf16>
    %5 = vector.shape_cast %4 : vector<1x72x128xbf16> to vector<72x128xbf16>
    %cst_5 = arith.constant dense<0.000000e+00> : vector<16x128xf32>
    %6 = tpu.matmul %3, %5, %cst_5 {dimension_numbers = #tpu.dot_dimension_numbers<[1], [0], [0], [1], [0, 0, 1, 1], [], []>} : vector<16x72xbf16>, vector<72x128xbf16>, vector<16x128xf32> -> vector<16x128xf32>
    %7 = arith.addf %2, %6 : vector<16x128xf32>
    %8 = vector.extract_strided_slice %1 {offsets = [1, 0], sizes = [16, 72], strides = [1, 1]} : vector<18x72xbf16> to vector<16x72xbf16>
    %c1 = arith.constant 1 : index
    %c0_6 = arith.constant 0 : index
    %c0_7 = arith.constant 0 : index
    %9 = vector.load %arg2[%c1, %c0_6, %c0_7] : memref<3x72x128xbf16, #tpu.memory_space<vmem>>, vector<1x72x128xbf16>
    %10 = vector.shape_cast %9 : vector<1x72x128xbf16> to vector<72x128xbf16>
    %cst_8 = arith.constant dense<0.000000e+00> : vector<16x128xf32>
    %11 = tpu.matmul %8, %10, %cst_8 {dimension_numbers = #tpu.dot_dimension_numbers<[1], [0], [0], [1], [0, 0, 1, 1], [], []>} : vector<16x72xbf16>, vector<72x128xbf16>, vector<16x128xf32> -> vector<16x128xf32>
    %12 = arith.addf %7, %11 : vector<16x128xf32>
    %13 = vector.extract_strided_slice %1 {offsets = [2, 0], sizes = [16, 72], strides = [1, 1]} : vector<18x72xbf16> to vector<16x72xbf16>
    %c2 = arith.constant 2 : index
    %c0_9 = arith.constant 0 : index
    %c0_10 = arith.constant 0 : index
    %14 = vector.load %arg2[%c2, %c0_9, %c0_10] : memref<3x72x128xbf16, #tpu.memory_space<vmem>>, vector<1x72x128xbf16>
    %15 = vector.shape_cast %14 : vector<1x72x128xbf16> to vector<72x128xbf16>
    %cst_11 = arith.constant dense<0.000000e+00> : vector<16x128xf32>
    %16 = tpu.matmul %13, %15, %cst_11 {dimension_numbers = #tpu.dot_dimension_numbers<[1], [0], [0], [1], [0, 0, 1, 1], [], []>} : vector<16x72xbf16>, vector<72x128xbf16>, vector<16x128xf32> -> vector<16x128xf32>
    %17 = arith.addf %12, %16 : vector<16x128xf32>
    %c0_12 = arith.constant 0 : index
    %c0_13 = arith.constant 0 : index
    %c0_14 = arith.constant 0 : index
    %18 = vector.load %arg3[%c0_12, %c0_13, %c0_14] : memref<1x16x128xf32, #tpu.memory_space<vmem>>, vector<1x16x128xf32>
    %19 = vector.shape_cast %18 : vector<1x16x128xf32> to vector<16x128xf32>
    %20 = vector.shape_cast %17 : vector<16x128xf32> to vector<1x16x128xf32>
    tpu.vector_store %arg3[%c0_12, %c0_13, %c0_14], %20 {strides = array<i32>} : memref<1x16x128xf32, #tpu.memory_space<vmem>>, vector<1x16x128xf32>,
    %cst_15 = arith.constant dense<0.000000e+00> : vector<128xf32>
    %21 = vector.multi_reduction <add>, %17, %cst_15 [0] : vector<16x128xf32> to vector<128xf32>
    %22 = vector.shape_cast %21 : vector<128xf32> to vector<1x128xf32>
    %23 = arith.mulf %17, %17 : vector<16x128xf32>
    %cst_16 = arith.constant dense<0.000000e+00> : vector<128xf32>
    %24 = vector.multi_reduction <add>, %23, %cst_16 [0] : vector<16x128xf32> to vector<128xf32>
    %25 = vector.shape_cast %24 : vector<128xf32> to vector<1x128xf32>
    %26 = tpu.concatenate %22, %25 in 0 : vector<1x128xf32>, vector<1x128xf32> -> vector<2x128xf32>
    %c0_17 = arith.constant 0 : index
    %c0_18 = arith.constant 0 : index
    %c0_19 = arith.constant 0 : index
    %27 = vector.load %arg4[%c0_17, %c0_18, %c0_19] : memref<1x2x128xf32, #tpu.memory_space<vmem>>, vector<1x2x128xf32>
    %28 = vector.shape_cast %27 : vector<1x2x128xf32> to vector<2x128xf32>
    %29 = vector.shape_cast %26 : vector<2x128xf32> to vector<1x2x128xf32>
    tpu.vector_store %arg4[%c0_17, %c0_18, %c0_19], %29 {strides = array<i32>} : memref<1x2x128xf32, #tpu.memory_space<vmem>>, vector<1x2x128xf32>,
    return
  }
  func.func @transform_0(%arg0: i32) -> (i32, i32, i32) {
    %c0_i32 = arith.constant 0 : i32
    %c0_i32_0 = arith.constant 0 : i32
    %c0_i32_1 = arith.constant 0 : i32
    return %arg0, %c0_i32, %c0_i32_0 : i32, i32, i32
  }
  func.func @transform_1(%arg0: i32) -> (i32, i32, i32) {
    %c0_i32 = arith.constant 0 : i32
    %c0_i32_0 = arith.constant 0 : i32
    %c0_i32_1 = arith.constant 0 : i32
    %c0_i32_2 = arith.constant 0 : i32
    return %c0_i32, %c0_i32_0, %c0_i32_1 : i32, i32, i32
  }
  func.func @transform_2(%arg0: i32) -> (i32, i32, i32) {
    %c0_i32 = arith.constant 0 : i32
    %c0_i32_0 = arith.constant 0 : i32
    %c0_i32_1 = arith.constant 0 : i32
    return %arg0, %c0_i32, %c0_i32_0 : i32, i32, i32
  }
  func.func @transform_3(%arg0: i32) -> (i32, i32, i32) {
    %c0_i32 = arith.constant 0 : i32
    %c0_i32_0 = arith.constant 0 : i32
    %c0_i32_1 = arith.constant 0 : i32
    return %arg0, %c0_i32, %c0_i32_0 : i32, i32, i32
  }
}

module attributes {stable_mosaic.version = 11 : i64} {
  func.func @_bn_relu_conv_stats_kernel(%arg0: i32, %arg1: memref<1x16x128xf32, #tpu.memory_space<vmem>>, %arg2: memref<1x128xf32, #tpu.memory_space<vmem>>, %arg3: memref<1x128xf32, #tpu.memory_space<vmem>>, %arg4: memref<3x144x128xbf16, #tpu.memory_space<vmem>>, %arg5: memref<1x16x128xf32, #tpu.memory_space<vmem>>, %arg6: memref<1x2x128xf32, #tpu.memory_space<vmem>>, %arg7: memref<18x144xf32, #tpu.memory_space<vmem>>) attributes {dimension_semantics = [#tpu.dimension_semantics<parallel>], iteration_bounds = array<i64: 2>, scalar_prefetch = 0 : i64, scratch_operands = 1 : i64, tpu.core_type = #tpu.core_type<tc>, window_params = [{transform_indices = @transform_0, window_bounds = array<i64: 1, 16, 128>}, {pipeline_mode = #tpu.pipeline_mode<synchronous>, transform_indices = @transform_1, window_bounds = array<i64: 1, 128>}, {pipeline_mode = #tpu.pipeline_mode<synchronous>, transform_indices = @transform_2, window_bounds = array<i64: 1, 128>}, {pipeline_mode = #tpu.pipeline_mode<synchronous>, transform_indices = @transform_3, window_bounds = array<i64: 3, 144, 128>}, {transform_indices = @transform_4, window_bounds = array<i64: 1, 16, 128>}, {transform_indices = @transform_5, window_bounds = array<i64: 1, 2, 128>}]} {
    %c0 = arith.constant 0 : index
    %c0_0 = arith.constant 0 : index
    %c0_1 = arith.constant 0 : index
    %0 = vector.load %arg1[%c0, %c0_0, %c0_1] : memref<1x16x128xf32, #tpu.memory_space<vmem>>, vector<1x16x128xf32>
    %1 = vector.shape_cast %0 : vector<1x16x128xf32> to vector<16x128xf32>
    %c0_2 = arith.constant 0 : index
    %c0_3 = arith.constant 0 : index
    %2 = vector.load %arg2[%c0_2, %c0_3] : memref<1x128xf32, #tpu.memory_space<vmem>>, vector<1x128xf32>
    %3 = vector.shape_cast %2 : vector<1x128xf32> to vector<128xf32>
    %4 = vector.shape_cast %3 : vector<128xf32> to vector<1x128xf32>
    %5 = vector.broadcast %4 : vector<1x128xf32> to vector<16x128xf32>
    %6 = arith.mulf %1, %5 : vector<16x128xf32>
    %c0_4 = arith.constant 0 : index
    %c0_5 = arith.constant 0 : index
    %7 = vector.load %arg3[%c0_4, %c0_5] : memref<1x128xf32, #tpu.memory_space<vmem>>, vector<1x128xf32>
    %8 = vector.shape_cast %7 : vector<1x128xf32> to vector<128xf32>
    %9 = vector.shape_cast %8 : vector<128xf32> to vector<1x128xf32>
    %10 = vector.broadcast %9 : vector<1x128xf32> to vector<16x128xf32>
    %11 = arith.addf %6, %10 : vector<16x128xf32>
    %cst = arith.constant 0.000000e+00 : f32
    %12 = vector.broadcast %cst : f32 to vector<16x128xf32>
    %13 = arith.maximumf %11, %12 : vector<16x128xf32>
    %cst_6 = arith.constant 0.000000e+00 : f32
    %14 = vector.broadcast %cst_6 : f32 to vector<1x144xf32>
    %cst_7 = arith.constant 0.000000e+00 : f32
    %15 = vector.broadcast %cst_7 : f32 to vector<16x8xf32>
    %c0_8 = arith.constant 0 : index
    %c0_9 = arith.constant 0 : index
    %16 = vector.load %arg7[%c0_8, %c0_9] : memref<18x144xf32, #tpu.memory_space<vmem>>, vector<1x144xf32>
    tpu.vector_store %arg7[%c0_8, %c0_9], %14 {strides = array<i32>} : memref<18x144xf32, #tpu.memory_space<vmem>>, vector<1x144xf32>,
    %c17 = arith.constant 17 : index
    %c0_10 = arith.constant 0 : index
    %17 = vector.load %arg7[%c17, %c0_10] : memref<18x144xf32, #tpu.memory_space<vmem>>, vector<1x144xf32>
    tpu.vector_store %arg7[%c17, %c0_10], %14 {strides = array<i32>} : memref<18x144xf32, #tpu.memory_space<vmem>>, vector<1x144xf32>,
    %c1 = arith.constant 1 : index
    %c0_11 = arith.constant 0 : index
    %18 = vector.load %arg7[%c1, %c0_11] : memref<18x144xf32, #tpu.memory_space<vmem>>, vector<16x8xf32>
    tpu.vector_store %arg7[%c1, %c0_11], %15 {strides = array<i32>} : memref<18x144xf32, #tpu.memory_space<vmem>>, vector<16x8xf32>,
    %c1_12 = arith.constant 1 : index
    %c136 = arith.constant 136 : index
    %19 = vector.load %arg7[%c1_12, %c136] : memref<18x144xf32, #tpu.memory_space<vmem>>, vector<16x8xf32>
    tpu.vector_store %arg7[%c1_12, %c136], %15 {strides = array<i32>} : memref<18x144xf32, #tpu.memory_space<vmem>>, vector<16x8xf32>,
    %c1_13 = arith.constant 1 : index
    %c8 = arith.constant 8 : index
    %20 = vector.load %arg7[%c1_13, %c8] : memref<18x144xf32, #tpu.memory_space<vmem>>, vector<16x128xf32>
    tpu.vector_store %arg7[%c1_13, %c8], %13 {strides = array<i32>} : memref<18x144xf32, #tpu.memory_space<vmem>>, vector<16x128xf32>,
    %cst_14 = arith.constant 0.000000e+00 : f32
    %21 = vector.broadcast %cst_14 : f32 to vector<16x128xf32>
    %c0_15 = arith.constant 0 : index
    %c0_16 = arith.constant 0 : index
    %22 = vector.load %arg7[%c0_15, %c0_16] : memref<18x144xf32, #tpu.memory_space<vmem>>, vector<16x144xf32>
    %23 = arith.truncf %22 : vector<16x144xf32> to vector<16x144xbf16>
    %c0_17 = arith.constant 0 : index
    %c0_18 = arith.constant 0 : index
    %c0_19 = arith.constant 0 : index
    %24 = vector.load %arg4[%c0_17, %c0_18, %c0_19] : memref<3x144x128xbf16, #tpu.memory_space<vmem>>, vector<1x144x128xbf16>
    %25 = vector.shape_cast %24 : vector<1x144x128xbf16> to vector<144x128xbf16>
    %cst_20 = arith.constant dense<0.000000e+00> : vector<16x128xf32>
    %26 = tpu.matmul %23, %25, %cst_20 {dimension_numbers = #tpu.dot_dimension_numbers<[1], [0], [0], [1], [0, 0, 1, 1], [], []>} : vector<16x144xbf16>, vector<144x128xbf16>, vector<16x128xf32> -> vector<16x128xf32>
    %27 = arith.addf %21, %26 : vector<16x128xf32>
    %c1_21 = arith.constant 1 : index
    %c0_22 = arith.constant 0 : index
    %28 = vector.load %arg7[%c1_21, %c0_22] : memref<18x144xf32, #tpu.memory_space<vmem>>, vector<16x144xf32>
    %29 = arith.truncf %28 : vector<16x144xf32> to vector<16x144xbf16>
    %c1_23 = arith.constant 1 : index
    %c0_24 = arith.constant 0 : index
    %c0_25 = arith.constant 0 : index
    %30 = vector.load %arg4[%c1_23, %c0_24, %c0_25] : memref<3x144x128xbf16, #tpu.memory_space<vmem>>, vector<1x144x128xbf16>
    %31 = vector.shape_cast %30 : vector<1x144x128xbf16> to vector<144x128xbf16>
    %cst_26 = arith.constant dense<0.000000e+00> : vector<16x128xf32>
    %32 = tpu.matmul %29, %31, %cst_26 {dimension_numbers = #tpu.dot_dimension_numbers<[1], [0], [0], [1], [0, 0, 1, 1], [], []>} : vector<16x144xbf16>, vector<144x128xbf16>, vector<16x128xf32> -> vector<16x128xf32>
    %33 = arith.addf %27, %32 : vector<16x128xf32>
    %c2 = arith.constant 2 : index
    %c0_27 = arith.constant 0 : index
    %34 = vector.load %arg7[%c2, %c0_27] : memref<18x144xf32, #tpu.memory_space<vmem>>, vector<16x144xf32>
    %35 = arith.truncf %34 : vector<16x144xf32> to vector<16x144xbf16>
    %c2_28 = arith.constant 2 : index
    %c0_29 = arith.constant 0 : index
    %c0_30 = arith.constant 0 : index
    %36 = vector.load %arg4[%c2_28, %c0_29, %c0_30] : memref<3x144x128xbf16, #tpu.memory_space<vmem>>, vector<1x144x128xbf16>
    %37 = vector.shape_cast %36 : vector<1x144x128xbf16> to vector<144x128xbf16>
    %cst_31 = arith.constant dense<0.000000e+00> : vector<16x128xf32>
    %38 = tpu.matmul %35, %37, %cst_31 {dimension_numbers = #tpu.dot_dimension_numbers<[1], [0], [0], [1], [0, 0, 1, 1], [], []>} : vector<16x144xbf16>, vector<144x128xbf16>, vector<16x128xf32> -> vector<16x128xf32>
    %39 = arith.addf %33, %38 : vector<16x128xf32>
    %c0_32 = arith.constant 0 : index
    %c0_33 = arith.constant 0 : index
    %c0_34 = arith.constant 0 : index
    %40 = vector.load %arg5[%c0_32, %c0_33, %c0_34] : memref<1x16x128xf32, #tpu.memory_space<vmem>>, vector<1x16x128xf32>
    %41 = vector.shape_cast %40 : vector<1x16x128xf32> to vector<16x128xf32>
    %42 = vector.shape_cast %39 : vector<16x128xf32> to vector<1x16x128xf32>
    tpu.vector_store %arg5[%c0_32, %c0_33, %c0_34], %42 {strides = array<i32>} : memref<1x16x128xf32, #tpu.memory_space<vmem>>, vector<1x16x128xf32>,
    %cst_35 = arith.constant dense<0.000000e+00> : vector<128xf32>
    %43 = vector.multi_reduction <add>, %39, %cst_35 [0] : vector<16x128xf32> to vector<128xf32>
    %44 = vector.shape_cast %43 : vector<128xf32> to vector<1x128xf32>
    %45 = arith.mulf %39, %39 : vector<16x128xf32>
    %cst_36 = arith.constant dense<0.000000e+00> : vector<128xf32>
    %46 = vector.multi_reduction <add>, %45, %cst_36 [0] : vector<16x128xf32> to vector<128xf32>
    %47 = vector.shape_cast %46 : vector<128xf32> to vector<1x128xf32>
    %48 = tpu.concatenate %44, %47 in 0 : vector<1x128xf32>, vector<1x128xf32> -> vector<2x128xf32>
    %c0_37 = arith.constant 0 : index
    %c0_38 = arith.constant 0 : index
    %c0_39 = arith.constant 0 : index
    %49 = vector.load %arg6[%c0_37, %c0_38, %c0_39] : memref<1x2x128xf32, #tpu.memory_space<vmem>>, vector<1x2x128xf32>
    %50 = vector.shape_cast %49 : vector<1x2x128xf32> to vector<2x128xf32>
    %51 = vector.shape_cast %48 : vector<2x128xf32> to vector<1x2x128xf32>
    tpu.vector_store %arg6[%c0_37, %c0_38, %c0_39], %51 {strides = array<i32>} : memref<1x2x128xf32, #tpu.memory_space<vmem>>, vector<1x2x128xf32>,
    return
  }
  func.func @transform_0(%arg0: i32) -> (i32, i32, i32) {
    %c0_i32 = arith.constant 0 : i32
    %c0_i32_0 = arith.constant 0 : i32
    %c0_i32_1 = arith.constant 0 : i32
    return %arg0, %c0_i32, %c0_i32_0 : i32, i32, i32
  }
  func.func @transform_1(%arg0: i32) -> (i32, i32) {
    %c0_i32 = arith.constant 0 : i32
    %c0_i32_0 = arith.constant 0 : i32
    %c0_i32_1 = arith.constant 0 : i32
    return %c0_i32, %c0_i32_0 : i32, i32
  }
  func.func @transform_2(%arg0: i32) -> (i32, i32) {
    %c0_i32 = arith.constant 0 : i32
    %c0_i32_0 = arith.constant 0 : i32
    %c0_i32_1 = arith.constant 0 : i32
    return %c0_i32, %c0_i32_0 : i32, i32
  }
  func.func @transform_3(%arg0: i32) -> (i32, i32, i32) {
    %c0_i32 = arith.constant 0 : i32
    %c0_i32_0 = arith.constant 0 : i32
    %c0_i32_1 = arith.constant 0 : i32
    %c0_i32_2 = arith.constant 0 : i32
    return %c0_i32, %c0_i32_0, %c0_i32_1 : i32, i32, i32
  }
  func.func @transform_4(%arg0: i32) -> (i32, i32, i32) {
    %c0_i32 = arith.constant 0 : i32
    %c0_i32_0 = arith.constant 0 : i32
    %c0_i32_1 = arith.constant 0 : i32
    return %arg0, %c0_i32, %c0_i32_0 : i32, i32, i32
  }
  func.func @transform_5(%arg0: i32) -> (i32, i32, i32) {
    %c0_i32 = arith.constant 0 : i32
    %c0_i32_0 = arith.constant 0 : i32
    %c0_i32_1 = arith.constant 0 : i32
    return %arg0, %c0_i32, %c0_i32_0 : i32, i32, i32
  }
}

module attributes {stable_mosaic.version = 11 : i64} {
  func.func @_bn_relu_kernel(%arg0: i32, %arg1: memref<1x16x128xf32, #tpu.memory_space<vmem>>, %arg2: memref<1x128xf32, #tpu.memory_space<vmem>>, %arg3: memref<1x128xf32, #tpu.memory_space<vmem>>, %arg4: memref<1x16x128xf32, #tpu.memory_space<vmem>>) attributes {dimension_semantics = [#tpu.dimension_semantics<parallel>], iteration_bounds = array<i64: 2>, scalar_prefetch = 0 : i64, scratch_operands = 0 : i64, tpu.core_type = #tpu.core_type<tc>, window_params = [{transform_indices = @transform_0, window_bounds = array<i64: 1, 16, 128>}, {pipeline_mode = #tpu.pipeline_mode<synchronous>, transform_indices = @transform_1, window_bounds = array<i64: 1, 128>}, {pipeline_mode = #tpu.pipeline_mode<synchronous>, transform_indices = @transform_2, window_bounds = array<i64: 1, 128>}, {transform_indices = @transform_3, window_bounds = array<i64: 1, 16, 128>}]} {
    %c0 = arith.constant 0 : index
    %c0_0 = arith.constant 0 : index
    %c0_1 = arith.constant 0 : index
    %0 = vector.load %arg1[%c0, %c0_0, %c0_1] : memref<1x16x128xf32, #tpu.memory_space<vmem>>, vector<1x16x128xf32>
    %1 = vector.shape_cast %0 : vector<1x16x128xf32> to vector<16x128xf32>
    %c0_2 = arith.constant 0 : index
    %c0_3 = arith.constant 0 : index
    %2 = vector.load %arg2[%c0_2, %c0_3] : memref<1x128xf32, #tpu.memory_space<vmem>>, vector<1x128xf32>
    %3 = vector.shape_cast %2 : vector<1x128xf32> to vector<128xf32>
    %4 = vector.shape_cast %3 : vector<128xf32> to vector<1x128xf32>
    %5 = vector.broadcast %4 : vector<1x128xf32> to vector<16x128xf32>
    %6 = arith.mulf %1, %5 : vector<16x128xf32>
    %c0_4 = arith.constant 0 : index
    %c0_5 = arith.constant 0 : index
    %7 = vector.load %arg3[%c0_4, %c0_5] : memref<1x128xf32, #tpu.memory_space<vmem>>, vector<1x128xf32>
    %8 = vector.shape_cast %7 : vector<1x128xf32> to vector<128xf32>
    %9 = vector.shape_cast %8 : vector<128xf32> to vector<1x128xf32>
    %10 = vector.broadcast %9 : vector<1x128xf32> to vector<16x128xf32>
    %11 = arith.addf %6, %10 : vector<16x128xf32>
    %cst = arith.constant 0.000000e+00 : f32
    %12 = vector.broadcast %cst : f32 to vector<16x128xf32>
    %13 = arith.maximumf %11, %12 : vector<16x128xf32>
    %c0_6 = arith.constant 0 : index
    %c0_7 = arith.constant 0 : index
    %c0_8 = arith.constant 0 : index
    %14 = vector.load %arg4[%c0_6, %c0_7, %c0_8] : memref<1x16x128xf32, #tpu.memory_space<vmem>>, vector<1x16x128xf32>
    %15 = vector.shape_cast %14 : vector<1x16x128xf32> to vector<16x128xf32>
    %16 = vector.shape_cast %13 : vector<16x128xf32> to vector<1x16x128xf32>
    tpu.vector_store %arg4[%c0_6, %c0_7, %c0_8], %16 {strides = array<i32>} : memref<1x16x128xf32, #tpu.memory_space<vmem>>, vector<1x16x128xf32>,
    return
  }
  func.func @transform_0(%arg0: i32) -> (i32, i32, i32) {
    %c0_i32 = arith.constant 0 : i32
    %c0_i32_0 = arith.constant 0 : i32
    %c0_i32_1 = arith.constant 0 : i32
    return %arg0, %c0_i32, %c0_i32_0 : i32, i32, i32
  }
  func.func @transform_1(%arg0: i32) -> (i32, i32) {
    %c0_i32 = arith.constant 0 : i32
    %c0_i32_0 = arith.constant 0 : i32
    %c0_i32_1 = arith.constant 0 : i32
    return %c0_i32, %c0_i32_0 : i32, i32
  }
  func.func @transform_2(%arg0: i32) -> (i32, i32) {
    %c0_i32 = arith.constant 0 : i32
    %c0_i32_0 = arith.constant 0 : i32
    %c0_i32_1 = arith.constant 0 : i32
    return %c0_i32, %c0_i32_0 : i32, i32
  }
  func.func @transform_3(%arg0: i32) -> (i32, i32, i32) {
    %c0_i32 = arith.constant 0 : i32
    %c0_i32_0 = arith.constant 0 : i32
    %c0_i32_1 = arith.constant 0 : i32
    return %arg0, %c0_i32, %c0_i32_0 : i32, i32, i32
  }
}

</mosaic_0001>

<bundles_post_ra>
// kernel: tile.28
= control target key start
LH: loop header
LB: loop body
LE: loop exit
PB: predicated region body
PF: predicated region fallthrough
CT: control target
= control target key end

     0   :  { %s28_s0 = inlined_call_operand.vmem [shape: f32[8], index: 0, kind: input, shape index: {}]   ;;  %s29_s1 = inlined_call_operand.vmem [shape: f32[16,8], index: 1, kind: output, shape index: {}]  }
   0x1   :  { %v4_v0 = vld [vmem:[%s28_s0] ss:$0 sm:$0xff] }
   0x2   :  { %5 = vst [vmem:[%s29_s1] sm:$0xff] %v4_v0 }
   0x3   :  { %8 = vst [vmem:[%s29_s1 + $0x8] sm:$0xff] %v4_v0 }

// kernel: tile.29
= control target key start
LH: loop header
LB: loop body
LE: loop exit
PB: predicated region body
PF: predicated region fallthrough
CT: control target
= control target key end

     0   :  { %s131_s10 = smov 120   ;;  %s132_s11 = smov 104   ;;  %vm3_vm0 = vcmask 64512   ;;  %vm9_vm1 = vcmask 1048512   ;;  %vm15_vm2 = vcmask 982912   ;;  %vm21_vm3 = vcmask 917312   ;;  %s207_s0 = inlined_call_operand.vmem [shape: f32[16,8], index: 0, kind: input, shape index: {}]   ;;  %s208_s1 = inlined_call_operand.vmem [shape: f32[1,128], index: 1, kind: output, shape index: {}]  }
   0x1   :  { %v101_v0 = vld [vmem:[%s207_s0 + $0xf] sm:$0x1]   ;;  %v103_v1 = vld [vmem:[%s207_s0 + $0xd] sm:$0x1]   ;;  %v105_v2 = vld [vmem:[%s207_s0 + $0xb] sm:$0x1]  }
   0x2   :  { %7 = vrot.lane.b32.xlu0 %v101_v0, %s131_s10  ;;  %19 = vrot.lane.b32.xlu1 %v103_v1, %s132_s11  ;;  %s133_s14 = smov 88   ;;  %v102_v3 = vld [vmem:[%s207_s0 + $0xe] sm:$0x1]   ;;  %v104_v4 = vld [vmem:[%s207_s0 + $0xc] sm:$0x1]   ;;  %s134_s19 = smov 112  }
   0x3   :  { %31 = vrot.lane.b32.xlu2 %v105_v2, %s133_s14  ;;  %s135_s20 = smov 96   ;;  %v106_v5 = vld [vmem:[%s207_s0 + $0xa] sm:$0x1]   ;;  %s136_s23 = smov 80   ;;  %v107_v6 = vld [vmem:[%s207_s0 + $0x9] sm:$0x1]  }
   0x4   :  { %v108_v7 = vld [vmem:[%s207_s0 + $0x8] sm:$0x1]   ;;  %s137_s28 = smov 72   ;;  %s138_s29 = smov 64   ;;  %v109_v8 = vld [vmem:[%s207_s0 + $0x7] sm:$0x1]  }
   0x5   :  { %s139_s3 = smov 56   ;;  %v110_v9 = vld [vmem:[%s207_s0 + $0x6] sm:$0x1]   ;;  %v111_v10 = vld [vmem:[%s207_s0 + $0x5] sm:$0x1]   ;;  %s140_s8 = smov 48  }
   0x6   :  { %s141_s9 = smov 40   ;;  %v112_v11 = vld [vmem:[%s207_s0 + $0x4] sm:$0x1]   ;;  %s142_s12 = smov 32   ;;  %v113_v12 = vld [vmem:[%s207_s0 + $0x3] sm:$0x1]  }
   0x7   :  { %v114_v13 = vld [vmem:[%s207_s0 + $0x2] sm:$0x1]   ;;  %s143_s17 = smov 24   ;;  %s144_s18 = smov 16   ;;  %v115_v14 = vld [vmem:[%s207_s0 + $0x1] sm:$0x1]  }
   0x8   :  { %s145_s21 = smov 8   ;;  %v2_v15 = vld [vmem:[%s207_s0] sm:$0x1]   ;;  %vm27_vm4 = vcmask 851712   ;;  %vm33_vm5 = vcmask 786112   ;;  %vm39_vm6 = vcmask 720512  }
   0x9   :  { %4 = vst.msk [vmem:[#allocation0] sm:$0x1] %vm3_vm0, %v2_v15   ;;  %vm45_vm7 = vcmask 654912   ;;  %vm51_vm8 = vcmask 589312   ;;  %vm57_vm9 = vcmask 523712   ;;  %vm63_vm10 = vcmask 458112  }
   0xa   :  { %13 = vrot.lane.b32.xlu0 %v102_v3, %s134_s19  ;;  %25 = vrot.lane.b32.xlu1 %v104_v4, %s135_s20  ;;  %vm69_vm11 = vcmask 392512   ;;  %vm75_vm12 = vcmask 326912   ;;  %vm81_vm13 = vcmask 261312   ;;  %vm87_vm14 = vcmask 195712  }
   0xb   :  { %37 = vrot.lane.b32.xlu2 %v106_v5, %s136_s23  ;;  %vm93_vm15 = vcmask 130112  }
  0x12   :  { %43 = vrot.lane.b32.xlu0 %v107_v6, %s137_s28  ;;  %49 = vrot.lane.b32.xlu1 %v108_v7, %s138_s29 }
  0x13   :  { %55 = vrot.lane.b32.xlu2 %v109_v8, %s139_s3 }
  0x1a   :  { %61 = vrot.lane.b32.xlu0 %v110_v9, %s140_s8  ;;  %67 = vrot.lane.b32.xlu1 %v111_v10, %s141_s9 }
  0x1b   :  { %73 = vrot.lane.b32.xlu2 %v112_v11, %s142_s12 }
  0x22   :  { %79 = vrot.lane.b32.xlu0 %v113_v12, %s143_s17  ;;  %85 = vrot.lane.b32.xlu1 %v114_v13, %s144_s18 }
  0x23   :  { %91 = vrot.lane.b32.xlu2 %v115_v14, %s145_s21 }
  0x5d   :  { %v32_v16 = vpop.permute.xlu2 %31  }
  0x65   :  { %v38_v17 = vpop.permute.xlu2 %37  }
  0x6d   :  { %v56_v18 = vpop.permute.xlu2 %55  }
  0x74   :  { %v8_v19 = vpop.permute.xlu0 %7   ;;  %v20_v20 = vpop.permute.xlu1 %19  }
  0x75   :  { %10 = vst.msk [vmem:[#allocation0] sm:$0x1] %vm9_vm1, %v8_v19   ;;  %v74_v21 = vpop.permute.xlu2 %73  }
  0x7c   :  { %v14_v22 = vpop.permute.xlu0 %13   ;;  %v26_v23 = vpop.permute.xlu1 %25  }
  0x7d   :  { %16 = vst.msk [vmem:[#allocation0] sm:$0x1] %vm15_vm2, %v14_v22   ;;  %v92_v24 = vpop.permute.xlu2 %91  }
  0x7e   :  { %22 = vst.msk [vmem:[#allocation0] sm:$0x1] %vm21_vm3, %v20_v20  }
  0x7f   :  { %28 = vst.msk [vmem:[#allocation0] sm:$0x1] %vm27_vm4, %v26_v23  }
  0x80   :  { %34 = vst.msk [vmem:[#allocation0] sm:$0x1] %vm33_vm5, %v32_v16  }
  0x81   :  { %40 = vst.msk [vmem:[#allocation0] sm:$0x1] %vm39_vm6, %v38_v17  }
  0x84   :  { %v44_v25 = vpop.permute.xlu0 %43   ;;  %v50_v26 = vpop.permute.xlu1 %49  }
  0x85   :  { %46 = vst.msk [vmem:[#allocation0] sm:$0x1] %vm45_vm7, %v44_v25  }
  0x86   :  { %52 = vst.msk [vmem:[#allocation0] sm:$0x1] %vm51_vm8, %v50_v26  }
  0x87   :  { %58 = vst.msk [vmem:[#allocation0] sm:$0x1] %vm57_vm9, %v56_v18  }
  0x8c   :  { %v62_v27 = vpop.permute.xlu0 %61   ;;  %v68_v28 = vpop.permute.xlu1 %67  }
  0x8d   :  { %64 = vst.msk [vmem:[#allocation0] sm:$0x1] %vm63_vm10, %v62_v27  }
  0x8e   :  { %70 = vst.msk [vmem:[#allocation0] sm:$0x1] %vm69_vm11, %v68_v28  }
  0x8f   :  { %76 = vst.msk [vmem:[#allocation0] sm:$0x1] %vm75_vm12, %v74_v21  }
  0x94   :  { %v80_v29 = vpop.permute.xlu0 %79   ;;  %v86_v30 = vpop.permute.xlu1 %85  }
  0x95   :  { %82 = vst.msk [vmem:[#allocation0] sm:$0x1] %vm81_vm13, %v80_v29  }
  0x96   :  { %88 = vst.msk [vmem:[#allocation0] sm:$0x1] %vm87_vm14, %v86_v30  }
  0x97   :  { %94 = vst.msk [vmem:[#allocation0] sm:$0x1] %vm93_vm15, %v92_v24  }
  0x9e   :  { %v97_v31 = vld [vmem:[#allocation0] sm:$0x1] }
  0x9f   :  { %100 = vst [vmem:[%s208_s1] sm:$0x1] %v97_v31 }

// kernel: double_conv.3
= control target key start
LH: loop header
LB: loop body
LE: loop exit
PB: predicated region body
PF: predicated region fallthrough
CT: control target
= control target key end

     0   :  { %s626_s12 = smov 0   ;;  %s696_s0 = inlined_call_operand.vmem [shape: bf16[2,18,72], index: 0, kind: input, shape index: {}]   ;;  %s697_s1 = inlined_call_operand.vmem [shape: bf16[3,72,128], index: 1, kind: input, shape index: {}]   ;;  %s698_s2 = inlined_call_operand.vmem [shape: f32[2,16,128], index: 2, kind: output, shape index: {0}]   ;;  %s699_s3 = inlined_call_operand.vmem [shape: f32[2,2,128], index: 3, kind: output, shape index: {1}]  }
   0x1 LB: > { %s491_s13 = sadd.s32 4294967295, %s604_s12   ;;  %p495_p0 = scmp.ge.s32.totalorder %s604_s12, 1  ;;  %s604_s12 = sphi %s626_s12, %s14_s12  }
   0x2   : > { %p140_p1 = scmp.lt.s32.totalorder %s604_s12, 3 }
   0x4   : > { %p141_p2 = pnand %p495_p0, %p140_p1 }
   0x5   : > { %p168_p3 = scmp.lt.s32.totalorder (!%p141_p2), %s491_s13, 1 }
   0x6   : > { %144 = sbr.rel (%p141_p2) target bundleno = 197 (0xc5), region = 28 }
   0xb   : > { %v508_v0 = vld [vmem:[%s697_s1 + $0x44] sm:$0xf]  ;;  %v194_v1 = vld [vmem:[%s697_s1 + $0x20] sm:$0xf]  ;;  %v555_v4 = vld [vmem:[%s697_s1 + $0x68] sm:$0xf] }
   0xc   : > { %v243_v2 = vunpack.c.l.b16 %v508_v0  ;;  %v292_v3 = vunpack.c.l.b16 %v194_v1  ;;  %vm257_vm0 = vcmask 1043456   ;;  %v352_v5 = vunpack.c.l.b16 %v555_v4  ;;  %s701_s13 = smov (!%p168_p3, %s491_s13), 1  ;;  %v584_v12 = vld [vmem:[%s697_s1 + $0x3c] sm:$0xff]  ;;  %v583_v18 = vld [vmem:[%s697_s1 + $0x34] sm:$0xff]  ;;  %v582_v23 = vld [vmem:[%s697_s1 + $0x2c] sm:$0xff] }
   0xd   : > { %s589_s20 = smul.u32 12, %s701_s13  ;;  %v580_v13 = vld [vmem:[%s697_s1 + $0x18] sm:$0xff]  ;;  %v588_v14 = vld [vmem:[%s697_s1 + $0x60] sm:$0xff]  ;;  %v579_v19 = vld [vmem:[%s697_s1 + $0x10] sm:$0xff]  ;;  %vm213_vm1 = vsmask.f32 7424 }
   0xe   : > { %v248_v6 = vpack.c.b16 %v243_v2, %v243_v2  ;;  %v297_v7 = vpack.c.b16 %v292_v3, %v292_v3  ;;  %v357_v8 = vpack.c.b16 %v352_v5, %v352_v5  ;;  %v587_v21 = vld [vmem:[%s697_s1 + $0x58] sm:$0xff]  ;;  %v578_v24 = vld [vmem:[%s697_s1 + $0x8] sm:$0xff]  ;;  %v586_v28 = vld [vmem:[%s697_s1 + $0x50] sm:$0xff]  ;;  %vm331_vm2 = vcmask 1046528   ;;  %s575_s23 = sshll.u32 %s701_s13, 4  ;;  %s499_s27 = sshll.u32 %s701_s13, 1 }
   0xf   : > { %s172_s29 = scalar_lea.vmem %s696_s0, %s589_s20  ;;  %v581_v29 = vld [vmem:[%s697_s1 + $0x24] sm:$0xff]  ;;  %vm253_vm3 = vcmask 588800   ;;  %s177_s26 = scalar_lea.vmem %s698_s2, %s575_s23  ;;  %vm402_vm4 = vcmask 1040384  }
  0x10   : > { %v259_v9 = vsel %vm257_vm0, %v248_v6, 0  ;;  %v305_v10 = vsel %vm257_vm0, %v297_v7, 0  ;;  %v366_v11 = vsel %vm257_vm0, %v357_v8, 0  ;;  %v576_v15 = vld [vmem:[%s172_s29] sm:$0xff]  ;;  %v185_v16 = vld [vmem:[%s172_s29 + $0x8] sm:$0x1]  ;;  %s181_s30 = scalar_lea.vmem %s699_s3, %s499_s27 }
  0x11   : > { %264 = vmatpush.bf16.msra.mxu0 %v259_v9  ;;  %310 = vmatpush.bf16.msra.mxu1 %v305_v10  ;;  %v210_v17 = vunpack.c.l.b16 %v185_v16  ;;  %v217_v20 = vshll.u32 %v576_v15, 16  ;;  %v215_v25 = vshrl.u32 %v576_v15, 16  ;;  %v577_v30 = vld [vmem:[%s697_s1] sm:$0xff]  ;;  %v585_v33 = vld [vmem:[%s697_s1 + $0x48] sm:$0xff]  ;;  %v332_v34 = vrot.slane %v576_v15, 1 }
  0x12   : > { %371 = vmatpush.bf16.msra.mxu2 %v366_v11 }
  0x13   : > { %v212_v22 = vpack.c.b16 %v210_v17, %v210_v17  ;;  %v219_v26 = vrot.slane %v217_v20, 1 }
  0x15   : > { %265 = vmatpush.bf16.msra.mxu0 %v584_v12  ;;  %311 = vmatpush.bf16.msra.mxu1 %v580_v13  ;;  %v222_v27 = vshll.u32 %v212_v22, 16  ;;  %v220_v31 = vor.u32 %v219_v26, %v215_v25  ;;  %v333_v35 = vrot.slane %v212_v22, 1 }
  0x16   : > { %372 = vmatpush.bf16.msra.mxu2 %v588_v14 }
  0x17   : > { %v224_v32 = vrot.slane %v222_v27, 1  ;;  %v334_v37 = vsel %vm331_vm2, %v332_v34, %v333_v35 }
  0x19   : > { %266 = vmatpush.bf16.msra.mxu0 %v583_v18  ;;  %312 = vmatpush.bf16.msra.mxu1 %v579_v19  ;;  %v225_v36 = vsel %vm213_vm1, %v220_v31, %v224_v32 }
  0x1a   : > { %373 = vmatpush.bf16.msra.mxu2 %v587_v21 }
  0x1d   : > { %267 = vmatpush.bf16.msra.mxu0 %v582_v23  ;;  %313 = vmatpush.bf16.msra.mxu1 %v578_v24 }
  0x1e   : > { %374 = vmatpush.bf16.msra.mxu2 %v586_v28 }
  0x21   : > { %268 = vmatpush.bf16.msra.mxu0 %v581_v29  ;;  %314 = vmatpush.bf16.msra.mxu1 %v577_v30 }
  0x22   : > { %375 = vmatpush.bf16.msra.mxu2 %v585_v33 }
  0x24   : > { %529 = vmatmul.msk.bf16.vlgmr.msra.gmra.mxu0 %vm253_vm3, %v225_v36  ;;  %546 = vmatmul.msk.bf16.vlgmr.msra.gmra.mxu1 %vm253_vm3, %v576_v15 }
  0x25   : > { %572 = vmatmul.msk.bf16.vlgmr.msra.gmra.mxu2 %vm253_vm3, %v334_v37 }
  0xa1   : > { %v270_v38 = vpop.f32.mrf.mxu0  ;;  %v316_v39 = vpop.f32.mrf.mxu1 }
  0xa2   : > { %v317_v40 = vadd.f32 %v316_v39, %v270_v38 }
  0xa8   : > { %v377_v41 = vpop.f32.mrf.mxu2 }
  0xa9   : > { %v382_v42 = vadd.f32 %v377_v41, %v317_v40  ;;  %v272_v43 = vpop.f32.mrf.mxu0  ;;  %v318_v44 = vpop.f32.mrf.mxu1 }
  0xaa   : > { %v319_v45 = vadd.f32 %v318_v44, %v272_v43 }
  0xab   : > { %384 = vst [vmem:[%s177_s26] sm:$0xff] %v382_v42  ;;  %v393_v48 = vmul.f32 %v382_v42, %v382_v42 }
  0xb0   : > { %v379_v46 = vpop.f32.mrf.mxu2 }
  0xb1   : > { %v383_v47 = vadd.f32 %v379_v46, %v319_v45 }
  0xb3   : > { %385 = vst [vmem:[%s177_s26 + $0x8] sm:$0xff] %v383_v47  ;;  %v386_v49 = vadd.f32 %v383_v47, %v382_v42  ;;  %v394_v50 = vmul.f32 %v383_v47, %v383_v47 }
  0xb5   : > { %v387_v51 = vrot.slane %v386_v49, 4  ;;  %v395_v52 = vadd.f32 %v394_v50, %v393_v48 }
  0xb7   : > { %v388_v53 = vadd.f32 %v387_v51, %v386_v49  ;;  %v396_v54 = vrot.slane %v395_v52, 4 }
  0xb9   : > { %v389_v55 = vrot.slane %v388_v53, 2  ;;  %v397_v56 = vadd.f32 %v396_v54, %v395_v52 }
  0xbb   : > { %v390_v57 = vadd.f32 %v389_v55, %v388_v53  ;;  %v398_v58 = vrot.slane %v397_v56, 2 }
  0xbd   : > { %v391_v59 = vrot.slane %v390_v57, 1  ;;  %v399_v60 = vadd.f32 %v398_v58, %v397_v56 }
  0xbf   : > { %v400_v61 = vrot.slane %v399_v60, 1  ;;  %v392_v62 = vadd.f32 %v391_v59, %v390_v57 }
  0xc1   : > { %v401_v63 = vadd.f32 %v400_v61, %v399_v60 }
  0xc3   : > { %v403_v0 = vsel %vm402_vm4, %v392_v62, %v401_v63 }
  0xc4   : > { %404 = vst [vmem:[%s181_s30] sm:$0x3] %v403_v0 }
  0xc5 PF: > { %s14_s12 = sadd.s32 1, %s604_s12  }
  0xc6   : > { %p11_p4 = scmp.ge.s32.totalorder %s14_s12, 4  }
  0xc8   :  { %13 = sbr.rel (!%p11_p4) target bundleno = 1 (0x1), region = 72 }

// kernel: double_conv.4
= control target key start
LH: loop header
LB: loop body
LE: loop exit
PB: predicated region body
PF: predicated region fallthrough
CT: control target
= control target key end

     0   :  { %s1018_s18 = smov 0   ;;  %s1144_s0 = inlined_call_operand.vmem [shape: f32[2,16,128], index: 0, kind: input, shape index: {}]   ;;  %s1145_s1 = inlined_call_operand.vmem [shape: f32[1,128], index: 1, kind: input, shape index: {}]   ;;  %s1146_s2 = inlined_call_operand.vmem [shape: f32[1,128], index: 2, kind: input, shape index: {}]   ;;  %s1147_s3 = inlined_call_operand.vmem [shape: bf16[3,144,128], index: 3, kind: input, shape index: {}]   ;;  %s1148_s4 = inlined_call_operand.vmem [shape: f32[2,16,128], index: 4, kind: output, shape index: {0}]   ;;  %s1149_s5 = inlined_call_operand.vmem [shape: f32[2,2,128], index: 5, kind: output, shape index: {1}]  }
   0x1 LB: > { %s778_s19 = sadd.s32 4294967295, %s984_s18   ;;  %p782_p0 = scmp.ge.s32.totalorder %s984_s18, 1  ;;  %s984_s18 = sphi %s1018_s18, %s16_s18  }
   0x2   : > { %p190_p1 = scmp.lt.s32.totalorder %s984_s18, 3 }
   0x4   : > { %p191_p2 = pnand %p782_p0, %p190_p1 }
   0x5   : > { %p222_p3 = scmp.lt.s32.totalorder (!%p191_p2), %s778_s19, 1  ;;  %s987_s15 = smov (!%p191_p2), 8  }
   0x6   : > { %194 = sbr.rel (%p191_p2) target bundleno = 336 (0x150), region = 36 }
   0xb   : > { %v946_v0 = vld [vmem:[%s1147_s3 + $0x38] sm:$0xff]  ;;  %s1151_s19 = smov (!%p222_p3, %s778_s19), 1  ;;  %v955_v1 = vld [vmem:[%s1147_s3 + $0x80] sm:$0xff]  ;;  %vm262_vm0 = vcmask 64513   ;;  %v945_v3 = vld [vmem:[%s1147_s3 + $0x30] sm:$0xff]  ;;  %v986_v4 = vmov 0.0   ;;  %v253_v20 = vlaneseq }
   0xc   : > { %v976_v2 = vld [vmem:[%s1145_s1] ss:$0 sm:$0xff]  ;;  %518 = vmatpush.bf16.msra.mxu2 %v946_v0  ;;  %263 = vst.msk [vmem:[#allocation2] sm:$0xfe] %vm262_vm0, %v986_v4  ;;  %vm268_vm1 = vcmask 130113   ;;  %s937_s28 = sshll.u32 %s1151_s19, 4  ;;  %433 = vmatpush.bf16.msra.mxu0 %v955_v1 }
   0xd   : > { %v954_v5 = vld [vmem:[%s1147_s3 + $0x78] sm:$0xff]  ;;  %269 = vst.msk [vmem:[#allocation2 + $0x8] sm:$0xfe] %vm268_vm1, %v986_v4  ;;  %s226_s8 = scalar_lea.vmem %s1144_s0, %s937_s28  ;;  %v977_v6 = vld [vmem:[%s1146_s2] ss:$0 sm:$0xff]  ;;  %v944_v11 = vld [vmem:[%s1147_s3 + $0x28] sm:$0xff]  ;;  %s231_s16 = scalar_lea.vmem %s1148_s4, %s937_s28 }
   0xe   : > { %v237_v7 = vld [vmem:[%s226_s8] sm:$0xff]  ;;  %v238_v8 = vld [vmem:[%s226_s8 + $0x8] sm:$0xff]  ;;  %vm276_vm2 = vcmask 1040384   ;;  %v953_v21 = vld [vmem:[%s1147_s3 + $0x70] sm:$0xff]  ;;  %vm266_vm3 = vcmask 57344   ;;  %vm272_vm4 = vcmask 122944  }
   0xf   : > { %v243_v9 = vmul.f32 %v976_v2, %v237_v7  ;;  %v244_v10 = vmul.f32 %v976_v2, %v238_v8  ;;  %v943_v16 = vld [vmem:[%s1147_s3 + $0x20] sm:$0xff]  ;;  %v942_v22 = vld [vmem:[%s1147_s3 + $0x18] sm:$0xff]  ;;  %267 = vst.msk [vmem:[#allocation2 + $0x20] sm:$0x1] %vm266_vm3, %v986_v4  ;;  %vm255_vm5 = vcmp.lt.s32.totalorder %v253_v20, 144  ;;  %v952_v23 = vld [vmem:[%s1147_s3 + $0x68] sm:$0xff] }
  0x10   : > { %519 = vmatpush.bf16.msra.mxu2 %v945_v3  ;;  %434 = vmatpush.bf16.msra.mxu0 %v954_v5  ;;  %v941_v24 = vld [vmem:[%s1147_s3 + $0x10] sm:$0xff]  ;;  %273 = vst.msk [vmem:[#allocation2 + $0x28] sm:$0x1] %vm272_vm4, %v986_v4  ;;  %vm264_vm6 = vcmask 64512   ;;  %vm270_vm7 = vcmask 130112   ;;  %v956_v25 = vld [vmem:[%s1147_s3 + $0x88] sm:$0xff] }
  0x11   : > { %v249_v12 = vadd.f32 %v977_v6, %v243_v9  ;;  %v250_v13 = vadd.f32 %v977_v6, %v244_v10  ;;  %265 = vst.msk [vmem:[#allocation2 + $0x10] sm:$0xff] %vm264_vm6, %v986_v4  ;;  %v951_v26 = vld [vmem:[%s1147_s3 + $0x60] sm:$0xff]  ;;  %v964_v27 = vld [vmem:[%s1147_s3 + $0xc8] sm:$0xff]  ;;  %454 = vmatpush.bf16.msra.mxu1 %v956_v25  ;;  %v950_v29 = vld [vmem:[%s1147_s3 + $0x58] sm:$0xff]  ;;  %vm289_vm8 = vcmask 1047617   ;;  %vm295_vm9 = vcmask 1040448  }
  0x12   : > { %271 = vst.msk [vmem:[#allocation2 + $0x18] sm:$0xff] %vm270_vm7, %v986_v4  ;;  %v940_v28 = vld [vmem:[%s1147_s3 + $0x8] sm:$0xff]  ;;  %v963_v30 = vld [vmem:[%s1147_s3 + $0xc0] sm:$0xff]  ;;  %v949_v33 = vld [vmem:[%s1147_s3 + $0x50] sm:$0xff]  ;;  %vm292_vm10 = vcmask 1047616   ;;  %vm429_vm11 = vcmask 130048  }
  0x13   : > { %v251_v14 = vmax.f32 %v249_v12, 0.0  ;;  %v252_v15 = vmax.f32 %v250_v13, 0.0  ;;  %257 = vst.msk [vmem:[#allocation2] ss:$8 sm:$0x3] %vm255_vm5, %v986_v4  ;;  %v947_v31 = vld [vmem:[%s1147_s3 + $0x40] sm:$0xff] }
  0x14   : > { %520 = vmatpush.bf16.msra.mxu2 %v944_v11  ;;  %435 = vmatpush.bf16.msra.mxu0 %v953_v21  ;;  %260 = vst.msk [vmem:[#allocation2 + $0x21] ss:$8 sm:$0x3] %vm255_vm5, %v986_v4  ;;  %v939_v32 = vld [vmem:[%s1147_s3] sm:$0xff]  ;;  %v962_v34 = vld [vmem:[%s1147_s3 + $0xb8] sm:$0xff]  ;;  %v965_v35 = vld [vmem:[%s1147_s3 + $0xd0] sm:$0xff] }
  0x15   : > { %v277_v17 = vrot.slane %v251_v14, 7  ;;  %v278_v18 = vrot.slane %v252_v15, 7  ;;  %642 = vmatpush.bf16.msrb.mxu1 %v964_v27  ;;  %539 = vmatpush.bf16.msra.mxu3 %v947_v31  ;;  %v948_v36 = vld [vmem:[%s1147_s3 + $0x48] sm:$0xff]  ;;  %v961_v37 = vld [vmem:[%s1147_s3 + $0xb0] sm:$0xff]  ;;  %v959_v39 = vld [vmem:[%s1147_s3 + $0xa0] sm:$0xff]  ;;  %vm577_vm13 = vcmask 1046528  }
  0x16   : > { %v960_v38 = vld [vmem:[%s1147_s3 + $0xa8] sm:$0xff]  ;;  %v958_v42 = vld [vmem:[%s1147_s3 + $0x98] sm:$0xff]  ;;  %v957_v43 = vld [vmem:[%s1147_s3 + $0x90] sm:$0xff]  ;;  %vm349_vm12 = vsmask.f32 7424  ;;  %s787_s28 = sshll.u32 %s1151_s19, 1 }
  0x17   : > { %280 = vrot.lane.b32.xlu0 %v277_v17, %s987_s15  ;;  %284 = vrot.lane.b32.xlu1 %v278_v18, %s987_s15  ;;  %v279_v19 = vsel %vm276_vm2, %v277_v17, %v278_v18  ;;  %s235_s21 = scalar_lea.vmem %s1149_s5, %s787_s28 }
  0x18   : > { %521 = vmatpush.bf16.msra.mxu2 %v943_v16  ;;  %436 = vmatpush.bf16.msra.mxu0 %v952_v23 }
  0x19   : > { %643 = vmatpush.bf16.msrb.mxu1 %v963_v30  ;;  %663 = vmatpush.bf16.msrb.mxu3 %v965_v35 }
  0x1c   : > { %522 = vmatpush.bf16.msra.mxu2 %v942_v22  ;;  %437 = vmatpush.bf16.msra.mxu0 %v951_v26 }
  0x1d   : > { %644 = vmatpush.bf16.msrb.mxu1 %v962_v34 }
  0x1f   : > { %282 = vrot.lane.b32.xlu0 %v279_v19, %s987_s15 }
  0x20   : > { %523 = vmatpush.bf16.msra.mxu2 %v941_v24  ;;  %438 = vmatpush.bf16.msra.mxu0 %v950_v29 }
  0x21   : > { %645 = vmatpush.bf16.msrb.mxu1 %v961_v37 }
  0x24   : > { %524 = vmatpush.bf16.msra.mxu2 %v940_v28  ;;  %439 = vmatpush.bf16.msra.mxu0 %v949_v33 }
  0x25   : > { %646 = vmatpush.bf16.msrb.mxu1 %v960_v38 }
  0x28   : > { %525 = vmatpush.bf16.msra.mxu2 %v939_v32  ;;  %440 = vmatpush.bf16.msra.mxu0 %v948_v36 }
  0x29   : > { %647 = vmatpush.bf16.msrb.mxu1 %v959_v39 }
  0x2d   : > { %648 = vmatpush.bf16.msrb.mxu1 %v958_v42 }
  0x31   : > { %649 = vmatpush.bf16.msrb.mxu1 %v957_v43 }
  0x89   : > { %v281_v40 = vpop.permute.xlu0 %280  ;;  %v285_v41 = vpop.permute.xlu1 %284 }
  0x8a   : > { %290 = vst.msk [vmem:[#allocation2] sm:$0xfe] %vm289_vm8, %v281_v40 }
  0x8b   : > { %291 = vst.msk [vmem:[#allocation2 + $0x8] sm:$0xfe] %vm262_vm0, %v281_v40 }
  0x8c   : > { %296 = vst.msk [vmem:[#allocation2 + $0x20] sm:$0x1] %vm295_vm9, %v285_v41 }
  0x8d   : > { %297 = vst.msk [vmem:[#allocation2 + $0x28] sm:$0x1] %vm266_vm3, %v285_v41 }
  0x91   : > { %v283_v44 = vpop.permute.xlu0 %282  ;;  %v298_v49 = vld [vmem:[#allocation2] sm:$0xff] }
  0x92   : > { %293 = vst.msk [vmem:[#allocation2 + $0x10] sm:$0xff] %vm292_vm10, %v283_v44  ;;  %v322_v51 = vld [vmem:[#allocation2] sm:$0xfe]  ;;  %v299_v54 = vld [vmem:[#allocation2 + $0x8] sm:$0xff] }
  0x93   : > { %294 = vst.msk [vmem:[#allocation2 + $0x18] sm:$0xff] %vm264_vm6, %v283_v44  ;;  %v324_v45 = vld [vmem:[#allocation2 + $0x20] sm:$0x1]  ;;  %v323_v56 = vld [vmem:[#allocation2 + $0x8] sm:$0xfe] }
  0x94   : > { %v325_v46 = vld [vmem:[#allocation2 + $0x28] sm:$0x1]  ;;  %v328_v47 = vpack.c.bf16 %v324_v45, %v324_v45  ;;  %v547_v10 = vld [vmem:[#allocation2 + $0x8] sm:$0xfc]  ;;  %v548_v15 = vld [vmem:[#allocation2 + $0x20] sm:$0x3] }
  0x95   : > { %v329_v48 = vpack.c.bf16 %v325_v46, %v325_v46  ;;  %v549_v7 = vld [vmem:[#allocation2 + $0x28] sm:$0x3]  ;;  %v546_v16 = vld [vmem:[#allocation2] sm:$0xfc]  ;;  %v552_v18 = vpack.c.bf16 %v548_v15, %v548_v15 }
  0x96   : > { %v358_v57 = vshll.u32 %v328_v47, 16  ;;  %v553_v12 = vpack.c.bf16 %v549_v7, %v549_v7 }
  0x97   : > { %v370_v60 = vshll.u32 %v329_v48, 16  ;;  %v579_v21 = vrot.slane %v552_v18, 1 }
  0x98   : > { %v360_v1 = vrot.slane %v358_v57, 1  ;;  %v582_v14 = vrot.slane %v553_v12, 1 }
  0x99   : > { %v300_v50 = vld [vmem:[#allocation2 + $0x10] sm:$0xff]  ;;  %v372_v4 = vrot.slane %v370_v60, 1 }
  0x9a   : > { %v302_v52 = vpack.c.bf16 %v300_v50, %v298_v49  ;;  %v326_v53 = vpack.c.bf16 %v300_v50, %v322_v51  ;;  %v301_v55 = vld [vmem:[#allocation2 + $0x18] sm:$0xff]  ;;  %v550_v17 = vpack.c.bf16 %v300_v50, %v546_v16 }
  0x9b   : > { %v303_v58 = vpack.c.bf16 %v301_v55, %v299_v54  ;;  %v327_v59 = vpack.c.bf16 %v301_v55, %v323_v56  ;;  %v551_v11 = vpack.c.bf16 %v301_v55, %v547_v10 }
  0x9c   : > { %526 = vmatmul.bf16.vlgmr.msra.gmra.mxu2 %v302_v52  ;;  %v353_v61 = vshll.u32 %v326_v53, 16  ;;  %v351_v63 = vshrl.u32 %v326_v53, 16  ;;  %v578_v20 = vrot.slane %v550_v17, 1 }
  0x9d   : > { %879 = vmatmul.msk.bf16.vlgmr.msra.gmra.mxu3 %vm429_vm11, %v303_v58  ;;  %v365_v62 = vshll.u32 %v327_v59, 16  ;;  %v363_v2 = vshrl.u32 %v327_v59, 16  ;;  %v581_v13 = vrot.slane %v551_v11, 1 }
  0x9e   : > { %v355_v0 = vrot.slane %v353_v61, 1  ;;  %v580_v22 = vsel %vm577_vm13, %v578_v20, %v579_v21 }
  0x9f   : > { %v367_v3 = vrot.slane %v365_v62, 1  ;;  %v583_v19 = vsel %vm577_vm13, %v581_v13, %v582_v14 }
  0xa0   : > { %v356_v5 = vor.u32 %v355_v0, %v351_v63 }
  0xa1   : > { %v368_v6 = vor.u32 %v367_v3, %v363_v2 }
  0xa2   : > { %v361_v8 = vsel %vm349_vm12, %v356_v5, %v360_v1 }
  0xa3   : > { %441 = vmatmul.bf16.vlgmr.msra.gmra.mxu0 %v361_v8  ;;  %v373_v9 = vsel %vm349_vm12, %v368_v6, %v372_v4 }
  0xa4   : > { %842 = vmatmul.msk.bf16.vlgmr.msra.gmra.mxu1 %vm429_vm11, %v373_v9 }
  0xad   : > { %934 = vmatmul.msk.bf16.vlgmr.msrb.gmra.mxu3 %vm429_vm11, %v583_v19 }
  0xb4   : > { %650 = vmatmul.bf16.vlgmr.msrb.gmra.mxu1 %v580_v22 }
 0x11f   : > { %v527_v29 = vpop.f32.mrf.mxu2 }
 0x120   : > { %v541_v23 = vpop.f32.mrf.mxu3  ;;  %v442_v25 = vpop.f32.mrf.mxu0 }
 0x121   : > { %v456_v24 = vpop.f32.mrf.mxu1 }
 0x122   : > { %v457_v28 = vadd.f32 %v456_v24, %v442_v25 }
 0x124   : > { %v528_v30 = vadd.f32 %v527_v29, %v457_v28 }
 0x126   : > { %v542_v35 = vadd.f32 %v541_v23, %v528_v30 }
 0x127   : > { %v529_v38 = vpop.f32.mrf.mxu2 }
 0x128   : > { %v543_v26 = vpop.f32.mrf.mxu3  ;;  %v444_v31 = vpop.f32.mrf.mxu0 }
 0x129   : > { %v458_v27 = vpop.f32.mrf.mxu1 }
 0x12a   : > { %v459_v34 = vadd.f32 %v458_v27, %v444_v31 }
 0x12c   : > { %v530_v39 = vadd.f32 %v529_v38, %v459_v34 }
 0x12e   : > { %v544_v42 = vadd.f32 %v543_v26, %v530_v39 }
 0x130   : > { %v665_v32 = vpop.f32.mrf.mxu3 }
 0x131   : > { %v651_v33 = vpop.f32.mrf.mxu1 }
 0x132   : > { %v666_v36 = vadd.f32 %v665_v32, %v651_v33 }
 0x134   : > { %v670_v37 = vadd.f32 %v666_v36, %v542_v35 }
 0x136   : > { %672 = vst [vmem:[%s231_s16] sm:$0xff] %v670_v37  ;;  %v681_v45 = vmul.f32 %v670_v37, %v670_v37 }
 0x138   : > { %v667_v40 = vpop.f32.mrf.mxu3 }
 0x139   : > { %v653_v41 = vpop.f32.mrf.mxu1 }
 0x13a   : > { %v668_v43 = vadd.f32 %v667_v40, %v653_v41 }
 0x13c   : > { %v671_v44 = vadd.f32 %v668_v43, %v544_v42 }
 0x13e   : > { %673 = vst [vmem:[%s231_s16 + $0x8] sm:$0xff] %v671_v44  ;;  %v674_v46 = vadd.f32 %v671_v44, %v670_v37  ;;  %v682_v47 = vmul.f32 %v671_v44, %v671_v44 }
 0x140   : > { %v675_v48 = vrot.slane %v674_v46, 4  ;;  %v683_v49 = vadd.f32 %v682_v47, %v681_v45 }
 0x142   : > { %v676_v50 = vadd.f32 %v675_v48, %v674_v46  ;;  %v684_v51 = vrot.slane %v683_v49, 4 }
 0x144   : > { %v677_v52 = vrot.slane %v676_v50, 2  ;;  %v685_v53 = vadd.f32 %v684_v51, %v683_v49 }
 0x146   : > { %v678_v54 = vadd.f32 %v677_v52, %v676_v50  ;;  %v686_v55 = vrot.slane %v685_v53, 2 }
 0x148   : > { %v679_v56 = vrot.slane %v678_v54, 1  ;;  %v687_v57 = vadd.f32 %v686_v55, %v685_v53 }
 0x14a   : > { %v688_v58 = vrot.slane %v687_v57, 1  ;;  %v680_v59 = vadd.f32 %v679_v56, %v678_v54 }
 0x14c   : > { %v689_v60 = vadd.f32 %v688_v58, %v687_v57 }
 0x14e   : > { %v690_v61 = vsel %vm276_vm2, %v680_v59, %v689_v60 }
 0x14f   : > { %691 = vst [vmem:[%s235_s21] sm:$0x3] %v690_v61 }
 0x150 PF: > { %s16_s18 = sadd.s32 1, %s984_s18  }
 0x151   : > { %p13_p4 = scmp.ge.s32.totalorder %s16_s18, 4  }
 0x153   :  { %15 = sbr.rel (!%p13_p4) target bundleno = 1 (0x1), region = 81 }

// kernel: double_conv.5
= control target key start
LH: loop header
LB: loop body
LE: loop exit
PB: predicated region body
PF: predicated region fallthrough
CT: control target
= control target key end

     0   :  { %s295_s12 = smov 0   ;;  %s312_s0 = inlined_call_operand.vmem [shape: f32[2,16,128], index: 0, kind: input, shape index: {}]   ;;  %s313_s1 = inlined_call_operand.vmem [shape: f32[1,128], index: 1, kind: input, shape index: {}]   ;;  %s314_s2 = inlined_call_operand.vmem [shape: f32[1,128], index: 2, kind: input, shape index: {}]   ;;  %s315_s3 = inlined_call_operand.vmem [shape: f32[2,16,128], index: 3, kind: output, shape index: {}]  }
   0x1 LB: > { %s244_s13 = sadd.s32 4294967295, %s273_s12   ;;  %p248_p0 = scmp.ge.s32.totalorder %s273_s12, 1  ;;  %s273_s12 = sphi %s295_s12, %s13_s12  }
   0x2   : > { %p137_p1 = scmp.lt.s32.totalorder %s273_s12, 3 }
   0x4   : > { %p138_p2 = pnand %p248_p0, %p137_p1 }
   0x5   : > { %p161_p3 = scmp.lt.s32.totalorder (!%p138_p2), %s244_s13, 1 }
   0x6   : > { %141 = sbr.rel (%p138_p2) target bundleno = 23 (0x17), region = 32 }
   0xb   : > { %s317_s13 = smov (!%p161_p3, %s244_s13), 1  ;;  %v265_v0 = vld [vmem:[%s313_s1] ss:$0 sm:$0xff] }
   0xc   : > { %s255_s16 = sshll.u32 %s317_s13, 4  ;;  %v266_v1 = vld [vmem:[%s314_s2] ss:$0 sm:$0xff] }
   0xd   : > { %s165_s19 = scalar_lea.vmem %s312_s0, %s255_s16  ;;  %s170_s24 = scalar_lea.vmem %s315_s3, %s255_s16 }
   0xe   : > { %v171_v2 = vld [vmem:[%s165_s19] sm:$0xff]  ;;  %v172_v3 = vld [vmem:[%s165_s19 + $0x8] sm:$0xff] }
   0xf   : > { %v177_v4 = vmul.f32 %v265_v0, %v171_v2  ;;  %v178_v5 = vmul.f32 %v265_v0, %v172_v3 }
  0x11   : > { %v183_v6 = vadd.f32 %v266_v1, %v177_v4  ;;  %v184_v7 = vadd.f32 %v266_v1, %v178_v5 }
  0x13   : > { %v185_v8 = vmax.f32 %v183_v6, 0.0  ;;  %v186_v9 = vmax.f32 %v184_v7, 0.0 }
  0x15   : > { %187 = vst [vmem:[%s170_s24] sm:$0xff] %v185_v8 }
  0x16   : > { %188 = vst [vmem:[%s170_s24 + $0x8] sm:$0xff] %v186_v9 }
  0x17 PF: > { %s13_s12 = sadd.s32 1, %s273_s12  }
  0x18   : > { %p10_p4 = scmp.ge.s32.totalorder %s13_s12, 4  }
  0x1a   :  { %12 = sbr.rel (!%p10_p4) target bundleno = 1 (0x1), region = 62 }

</bundles_post_ra>
